<compile_context>
chip_gen: v7x
topology: tpu7x:2x2x1
jax: 0.10.0
libtpu: 0.0.40
codegen_flags: <defaults>
</compile_context>

<pallas_src>
import functools

import jax
import jax.numpy as jnp
from jax import lax
from jax.experimental import pallas as pl
from jax.experimental.pallas import tpu as pltpu


def _cdiv(a, m):
    return -(-a // m)


def _round_up(a, m):
    return _cdiv(a, m) * m


def _pass1_kernel(x_ref, wst_ref, bst_ref, sigma_ref,
                  layout_ref, stats_ref,
                  acc_ref, cnt_ref,
                  *, c, nclass, hw, tile_hw, eps, mask_tail):
    """Per (batch, hw-tile): stacked matmul -> xv & logits, per-pixel softmax,
    emit the layout tile, accumulate per-class stats; finalize at last tile."""
    j = pl.program_id(1)

    @pl.when(j == 0)
    def _init():
        acc_ref[...] = jnp.zeros_like(acc_ref)
        cnt_ref[...] = jnp.zeros_like(cnt_ref)

    x = x_ref[0]                                                    # [c, t] bf16
    # one MXU pass: rows [0:c] = value conv, rows [c:] = effective logits
    zs = (jnp.dot(wst_ref[0], x, preferred_element_type=jnp.float32)
          + bst_ref[0])                                             # [c+n, t] f32
    xv = zs[:c]                                                     # [c, t]
    logits = zs[c:]                                                 # [n, t]

    # softmax over the class (sublane) axis; EUP approx reciprocal for the denom
    logits = logits - jnp.max(logits, axis=0, keepdims=True)
    e = jnp.exp(logits)
    inv_den = pl.reciprocal(jnp.sum(e, axis=0, keepdims=True), approx=True)
    layout = e * inv_den                                            # [n, t] f32
    layout_ref[0] = layout.astype(layout_ref.dtype)

    if mask_tail:
        # zero the padded pixels so they do not pollute cnt / a / b2
        lane = lax.broadcasted_iota(jnp.int32, (1, tile_hw), 1)
        layout = jnp.where((j * tile_hw + lane) < hw, layout, 0.0)

    cnt_ref[...] += jnp.sum(layout, axis=1, keepdims=True)          # [n, 1]

    # fused statistics contraction: [layout; layout^2] x [xv; xv^2]^T over hw
    ls = jnp.concatenate([layout, layout * layout], axis=0)         # [2n, t]
    xs = jnp.concatenate([xv, xv * xv], axis=0)                     # [2c, t]
    acc_ref[...] += lax.dot_general(ls, xs, (((1,), (1,)), ((), ())),
                                    preferred_element_type=jnp.float32)

    @pl.when(j == pl.num_programs(1) - 1)
    def _finalize():
        acc = acc_ref[...]
        a = acc[:nclass, :c]               # sum_p layout * xv        [n, c]
        b2 = acc[nclass:, c:]              # sum_p (layout * xv)^2    [n, c]
        cnt = cnt_ref[...] + eps           # [n, 1]
        mean = a / (hw * cnt)              # torch: mean(hot_area)/cnt
        # one-pass expansion of sum_p (hot - mean)^2 (clamped vs cancellation)
        # TODO(synk): cancellation-prone in f32 for extreme inputs; a centered
        #             two-pass would need hot[c, nClass, hw] materialized.
        ssq = jnp.maximum(b2 - 2.0 * mean * a + hw * mean * mean, 0.0)
        inv = pl.reciprocal(jnp.sqrt(ssq / cnt) + eps, approx=True)  # eps outside sqrt (matches torch)
        # sigma (SMEM scalar) folded in here so pass 2 has no scalar epilogue
        stats_ref[0] = sigma_ref[0] * jnp.concatenate([inv, mean * inv], axis=1)


def _pass2_kernel(x_ref, wv_ref, bv_ref, layout_ref, stats_ref, out_ref, *, c):
    """Per (batch, hw-tile): recompute xv and apply the attention normalization."""
    x = x_ref[0]                                                    # [c, t] bf16
    xv = (jnp.dot(wv_ref[...], x, preferred_element_type=jnp.float32)
          + bv_ref[...])                                            # [c, t] f32
    st = stats_ref[0].astype(jnp.bfloat16)                          # [n, 2c]
    lo = layout_ref[0]                                              # [n, t] bf16
    # single bf16 class contraction: rows [0:c] -> sum_n sigma*inv*layout,
    #                                rows [c:]  -> sum_n sigma*mean*inv*layout
    st_l = lax.dot_general(st, lo, (((0,), (0,)), ((), ())),
                           preferred_element_type=jnp.float32)      # [2c, t]
    out_ref[0] = (x.astype(jnp.float32) + xv * st_l[:c] - st_l[c:]
                  ).astype(out_ref.dtype)


def atten_norm_forward(x_nchw, params, sample_key, *, nClass=16, kama=10.0,
                       orth_lambda=0.001, eps=1e-7, out_dtype=jnp.bfloat16,
                       max_tile_hw=4096):
    b, c, h, w = x_nchw.shape
    hw = h * w

    # channels-on-sublanes, spatially flattened: pure reshape, no HBM transpose
    x_chw = x_nchw.reshape(b, c, hw)

    # torch.multinomial(uniform weights, nClass, replacement=True) == iid uniform
    # TODO(synk): cannot bit-match torch's RNG stream; jax.random equivalent.
    pos = jax.random.randint(sample_key, (nClass,), 0, hw)

    wk = params['wk'].astype(jnp.float32)            # [c//8, c]
    bk = params['bk'].astype(jnp.float32)            # [c//8]
    wq = params['wq'].astype(jnp.float32)            # [c//8, c]
    bq = params['bq'].astype(jnp.float32)            # [c//8]
    wv = params['wv'].astype(jnp.float32)            # [c, c]
    bv = params['bv'].astype(jnp.float32)            # [c]
    wm = params['wm'].astype(jnp.float32)            # [nClass, c]
    alpha = jnp.clip(params['alpha'].astype(jnp.float32).reshape(nClass), 0.0, 1.0)
    sigma = params['sigma'].astype(jnp.float32).reshape(1)

    # Fold key/query/mask path into one effective logits weight (tiny matmuls):
    #   fast_filters[b,n,:] = wk @ x[b,:,pos[n]] + bk
    #   W_eff[b,n,:] = (alpha[n] * fast_filters[b,n,:] @ wq + wm[n,:]) / kama
    #   b_eff[b,n]   = (alpha[n] * fast_filters[b,n,:] @ bq) / kama
    x_samp = jnp.take(x_chw, pos, axis=2).astype(jnp.float32)          # [b, c, n]
    ff = jnp.einsum('kc,bcn->bnk', wk, x_samp) + bk[None, None, :]     # [b, n, c//8]
    w_eff = (alpha[None, :, None] * jnp.einsum('bnk,kc->bnc', ff, wq)
             + wm[None]) * (1.0 / kama)                                # [b, n, c]
    b_eff = (alpha[None, :] * jnp.einsum('bnk,k->bn', ff, bq)
             )[..., None] * (1.0 / kama)                               # [b, n, 1]

    # stack value-conv rows with the effective-logits rows -> one MXU operand
    wst = jnp.concatenate(
        [jnp.broadcast_to(wv[None], (b, c, c)), w_eff], axis=1
    ).astype(jnp.bfloat16)                                             # [b, c+n, c]
    bst = jnp.concatenate(
        [jnp.broadcast_to(bv[None, :, None], (b, c, 1)), b_eff], axis=1
    )                                                                  # [b, c+n, 1] f32

    # lane-dense hw tiling (multiple of 128) with minimal padding
    hw128 = _round_up(hw, 128)
    n_hw = max(1, _cdiv(hw128, max_tile_hw))
    tile_hw = _round_up(_cdiv(hw128, n_hw), 128)
    hw_pad = tile_hw * n_hw

    xb = x_chw.astype(jnp.bfloat16)                                    # bf16 x stream
    if hw_pad != hw:
        xb = jnp.pad(xb, ((0, 0), (0, 0), (0, hw_pad - hw)))

    vmem_limit = 48 * 1024 * 1024   # safe on v5e/v6e (128 MiB) and v7x (64 MiB)

    pass1 = functools.partial(
        _pass1_kernel, c=c, nclass=nClass, hw=hw, tile_hw=tile_hw, eps=eps,
        mask_tail=(hw_pad != hw))
    layout_p, stats = pl.pallas_call(
        pass1,
        out_shape=(jax.ShapeDtypeStruct((b, nClass, hw_pad), jnp.bfloat16),
                   jax.ShapeDtypeStruct((b, nClass, 2 * c), jnp.float32)),
        grid=(b, n_hw),
        in_specs=[
            pl.BlockSpec((1, c, tile_hw), lambda i, j: (i, 0, j)),        # x tile
            pl.BlockSpec((1, c + nClass, c), lambda i, j: (i, 0, 0)),     # stacked W (bf16)
            pl.BlockSpec((1, c + nClass, 1), lambda i, j: (i, 0, 0)),     # stacked bias
            pl.BlockSpec(memory_space=pltpu.MemorySpace.SMEM),            # sigma scalar
        ],
        out_specs=(pl.BlockSpec((1, nClass, tile_hw), lambda i, j: (i, 0, j)),
                   pl.BlockSpec((1, nClass, 2 * c), lambda i, j: (i, 0, 0))),
        scratch_shapes=[pltpu.VMEM((2 * nClass, 2 * c), jnp.float32),     # a | b2
                        pltpu.VMEM((nClass, 1), jnp.float32)],            # cnt
        compiler_params=pltpu.CompilerParams(
            dimension_semantics=("parallel", "arbitrary"),
            vmem_limit_bytes=vmem_limit),
    )(xb, wst, bst, sigma)

    pass2 = functools.partial(_pass2_kernel, c=c)
    # TODO(synk): on v7x, if a trace shows exposed DMA at small tiles, add
    #             pipeline_mode=pl.Buffered(3) to the x BlockSpec below.
    out_p = pl.pallas_call(
        pass2,
        out_shape=jax.ShapeDtypeStruct((b, c, hw_pad), out_dtype),
        grid=(b, n_hw),
        in_specs=[
            pl.BlockSpec((1, c, tile_hw), lambda i, j: (i, 0, j)),        # x tile
            pl.BlockSpec((c, c), lambda i, j: (0, 0)),                    # wv (bf16)
            pl.BlockSpec((c, 1), lambda i, j: (0, 0)),                    # bv
            pl.BlockSpec((1, nClass, tile_hw), lambda i, j: (i, 0, j)),   # layout tile
            pl.BlockSpec((1, nClass, 2 * c), lambda i, j: (i, 0, 0)),     # stats
        ],
        out_specs=pl.BlockSpec((1, c, tile_hw), lambda i, j: (i, 0, j)),
        compiler_params=pltpu.CompilerParams(
            dimension_semantics=("parallel", "parallel"),
            vmem_limit_bytes=vmem_limit),
    )(xb, wv.astype(jnp.bfloat16), bv.reshape(c, 1), layout_p, stats)

    # kernel outputs are already channels-first: slice padding + reshape only
    out = out_p[:, :, :hw].reshape(b, c, h, w)
    layout = layout_p[:, :, :hw].reshape(b, nClass, h, w)

    # orth_loss depends only on parameters -> plain JAX glue (signed sum, per torch)
    sym = wm @ wm.T - jnp.eye(nClass, dtype=jnp.float32)
    orth_loss = orth_lambda * jnp.sum(sym)
    return out, layout, orth_loss


if __name__ == "__main__":
    key = jax.random.PRNGKey(0)
    b, c, h, w = 2, 32, 8, 8          # inplanes=32 (divisible by 8), 8x8 spatial
    nClass = 16
    ck = c // 8
    keys = jax.random.split(key, 10)

    x = jax.random.normal(keys[0], (b, c, h, w), dtype=jnp.float32)

    # Deterministic synthetic parameters (shapes from AttenNorm.__init__)
    params = {
        'wk': 0.1 * jax.random.normal(keys[1], (ck, c), jnp.float32),   # sn_key_conv
        'bk': 0.1 * jax.random.normal(keys[2], (ck,), jnp.float32),
        'wq': 0.1 * jax.random.normal(keys[3], (ck, c), jnp.float32),   # sn_query_conv
        'bq': 0.1 * jax.random.normal(keys[4], (ck,), jnp.float32),
        'wv': 0.1 * jax.random.normal(keys[5], (c, c), jnp.float32),    # sn_value_conv
        'bv': 0.1 * jax.random.normal(keys[6], (c,), jnp.float32),
        'wm': jax.random.normal(keys[7], (nClass, c), jnp.float32),     # x_mask_filters ~ N(0,1)
        'alpha': jnp.full((nClass,), 0.1, jnp.float32),                 # ones * 0.1
        'sigma': jnp.zeros((1,), jnp.float32),                          # zeros(1)
    }

    out, layout, orth_loss = atten_norm_forward(x, params, keys[8], nClass=nClass)
    jax.block_until_ready((out, layout, orth_loss))

    assert out.shape == (b, c, h, w)
    assert layout.shape == (b, nClass, h, w)
    out32 = out.astype(jnp.float32)
    lay32 = layout.astype(jnp.float32)
    assert jnp.isfinite(out32).all() and jnp.isfinite(lay32).all()
    assert jnp.isfinite(orth_loss)
    # softmax over classes must sum to ~1 per pixel (bf16 layout + approx recip)
    assert jnp.allclose(jnp.sum(lay32, axis=1), 1.0, atol=2e-2)
    # sigma initialized to zero -> out must equal x up to bf16 rounding
    assert jnp.max(jnp.abs(out32 - x)) < 5e-2
    print("KERNEL_OK")
</pallas_src>

<mosaic_0001>
module attributes {stable_mosaic.version = 11 : i64} {
  func.func @_pass1_kernel(%arg0: i32, %arg1: i32, %arg2: memref<1x32x128xbf16, #tpu.memory_space<vmem>>, %arg3: memref<1x48x32xbf16, #tpu.memory_space<vmem>>, %arg4: memref<1x48x1xf32, #tpu.memory_space<vmem>>, %arg5: memref<1xf32, #tpu.memory_space<smem>>, %arg6: memref<1x16x128xbf16, #tpu.memory_space<vmem>>, %arg7: memref<1x16x64xf32, #tpu.memory_space<vmem>>, %arg8: memref<32x64xf32, #tpu.memory_space<vmem>>, %arg9: memref<16x1xf32, #tpu.memory_space<vmem>>) attributes {dimension_semantics = [#tpu.dimension_semantics<parallel>, #tpu.dimension_semantics<arbitrary>], iteration_bounds = array<i64: 2, 1>, scalar_prefetch = 0 : i64, scratch_operands = 2 : i64, tpu.core_type = #tpu.core_type<tc>, window_params = [{transform_indices = @transform_0, window_bounds = array<i64: 1, 32, 128>}, {transform_indices = @transform_1, window_bounds = array<i64: 1, 48, 32>}, {transform_indices = @transform_2, window_bounds = array<i64: 1, 48, 1>}, {transform_indices = @transform_3, window_bounds = array<i64: 1>}, {transform_indices = @transform_4, window_bounds = array<i64: 1, 16, 128>}, {transform_indices = @transform_5, window_bounds = array<i64: 1, 16, 64>}]} {
    %c0_i32 = arith.constant 0 : i32
    %0 = arith.cmpi eq, %arg1, %c0_i32 : i32
    %1 = arith.extui %0 : i1 to i32
    %c0_i32_0 = arith.constant 0 : i32
    %2 = arith.cmpi ne, %1, %c0_i32_0 : i32
    scf.if %2 {
      %cst_27 = arith.constant 0.000000e+00 : f32
      %54 = vector.broadcast %cst_27 : f32 to vector<32x64xf32>
      %c0_28 = arith.constant 0 : index
      %c0_29 = arith.constant 0 : index
      %55 = vector.load %arg8[%c0_28, %c0_29] : memref<32x64xf32, #tpu.memory_space<vmem>>, vector<32x64xf32>
      tpu.vector_store %arg8[%c0_28, %c0_29], %54 {strides = array<i32>} : memref<32x64xf32, #tpu.memory_space<vmem>>, vector<32x64xf32>,
      %cst_30 = arith.constant 0.000000e+00 : f32
      %56 = vector.broadcast %cst_30 : f32 to vector<16x1xf32>
      %c0_31 = arith.constant 0 : index
      %c0_32 = arith.constant 0 : index
      %57 = vector.load %arg9[%c0_31, %c0_32] : memref<16x1xf32, #tpu.memory_space<vmem>>, vector<16x1xf32>
      tpu.vector_store %arg9[%c0_31, %c0_32], %56 {strides = array<i32>} : memref<16x1xf32, #tpu.memory_space<vmem>>, vector<16x1xf32>,
    } else {
    }
    %c0 = arith.constant 0 : index
    %c0_1 = arith.constant 0 : index
    %c0_2 = arith.constant 0 : index
    %3 = vector.load %arg2[%c0, %c0_1, %c0_2] : memref<1x32x128xbf16, #tpu.memory_space<vmem>>, vector<1x32x128xbf16>
    %4 = vector.shape_cast %3 : vector<1x32x128xbf16> to vector<32x128xbf16>
    %c0_3 = arith.constant 0 : index
    %c0_4 = arith.constant 0 : index
    %c0_5 = arith.constant 0 : index
    %5 = vector.load %arg3[%c0_3, %c0_4, %c0_5] : memref<1x48x32xbf16, #tpu.memory_space<vmem>>, vector<1x48x32xbf16>
    %6 = vector.shape_cast %5 : vector<1x48x32xbf16> to vector<48x32xbf16>
    %cst = arith.constant dense<0.000000e+00> : vector<48x128xf32>
    %7 = tpu.matmul %6, %4, %cst {dimension_numbers = #tpu.dot_dimension_numbers<[1], [0], [0], [1], [0, 0, 1, 1], [], []>} : vector<48x32xbf16>, vector<32x128xbf16>, vector<48x128xf32> -> vector<48x128xf32>
    %c0_6 = arith.constant 0 : index
    %c0_7 = arith.constant 0 : index
    %c0_8 = arith.constant 0 : index
    %8 = vector.load %arg4[%c0_6, %c0_7, %c0_8] : memref<1x48x1xf32, #tpu.memory_space<vmem>>, vector<1x48x1xf32>
    %9 = vector.shape_cast %8 : vector<1x48x1xf32> to vector<48x1xf32>
    %10 = vector.broadcast %9 : vector<48x1xf32> to vector<48x128xf32>
    %11 = arith.addf %7, %10 : vector<48x128xf32>
    %12 = vector.extract_strided_slice %11 {offsets = [0, 0], sizes = [32, 128], strides = [1, 1]} : vector<48x128xf32> to vector<32x128xf32>
    %13 = vector.extract_strided_slice %11 {offsets = [32, 0], sizes = [16, 128], strides = [1, 1]} : vector<48x128xf32> to vector<16x128xf32>
    %cst_9 = arith.constant dense<0xFF800000> : vector<128xf32>
    %14 = vector.multi_reduction <maximumf>, %13, %cst_9 [0] : vector<16x128xf32> to vector<128xf32>
    %15 = vector.shape_cast %14 : vector<128xf32> to vector<1x128xf32>
    %16 = vector.broadcast %15 : vector<1x128xf32> to vector<16x128xf32>
    %17 = arith.subf %13, %16 : vector<16x128xf32>
    %18 = math.exp %17 : vector<16x128xf32>
    %cst_10 = arith.constant dense<0.000000e+00> : vector<128xf32>
    %19 = vector.multi_reduction <add>, %18, %cst_10 [0] : vector<16x128xf32> to vector<128xf32>
    %20 = vector.shape_cast %19 : vector<128xf32> to vector<1x128xf32>
    %21 = tpu.reciprocal %20 {approx = true} : vector<1x128xf32> -> vector<1x128xf32>
    %22 = vector.broadcast %21 : vector<1x128xf32> to vector<16x128xf32>
    %23 = arith.mulf %18, %22 : vector<16x128xf32>
    %24 = arith.truncf %23 : vector<16x128xf32> to vector<16x128xbf16>
    %c0_11 = arith.constant 0 : index
    %c0_12 = arith.constant 0 : index
    %c0_13 = arith.constant 0 : index
    %25 = vector.load %arg6[%c0_11, %c0_12, %c0_13] : memref<1x16x128xbf16, #tpu.memory_space<vmem>>, vector<1x16x128xbf16>
    %26 = vector.shape_cast %25 : vector<1x16x128xbf16> to vector<16x128xbf16>
    %27 = vector.shape_cast %24 : vector<16x128xbf16> to vector<1x16x128xbf16>
    tpu.vector_store %arg6[%c0_11, %c0_12, %c0_13], %27 {strides = array<i32>} : memref<1x16x128xbf16, #tpu.memory_space<vmem>>, vector<1x16x128xbf16>,
    %28 = tpu.iota {dimensions = array<i32: 1>} : vector<1x128xi32>
    %c128_i32 = arith.constant 128 : i32
    %29 = arith.muli %arg1, %c128_i32 : i32
    %30 = vector.broadcast %29 : i32 to vector<1x128xi32>
    %31 = arith.addi %30, %28 : vector<1x128xi32>
    %c64_i32 = arith.constant 64 : i32
    %32 = vector.broadcast %c64_i32 : i32 to vector<1x128xi32>
    %33 = arith.cmpi slt, %31, %32 : vector<1x128xi32>
    %cst_14 = arith.constant 0.000000e+00 : f32
    %34 = vector.shape_cast %33 : vector<1x128xi1> to vector<1x128xi1>
    %35 = vector.broadcast %34 : vector<1x128xi1> to vector<16x128xi1>
    %36 = vector.broadcast %cst_14 : f32 to vector<16x128xf32>
    %37 = arith.select %35, %23, %36 : vector<16x128xi1>, vector<16x128xf32>
    %c0_15 = arith.constant 0 : index
    %c0_16 = arith.constant 0 : index
    %38 = vector.load %arg9[%c0_15, %c0_16] : memref<16x1xf32, #tpu.memory_space<vmem>>, vector<16x1xf32>
    %cst_17 = arith.constant dense<0.000000e+00> : vector<16xf32>
    %39 = vector.multi_reduction <add>, %37, %cst_17 [1] : vector<16x128xf32> to vector<16xf32>
    %40 = vector.shape_cast %39 : vector<16xf32> to vector<16x1xf32>
    %41 = arith.addf %38, %40 : vector<16x1xf32>
    %c0_18 = arith.constant 0 : index
    %c0_19 = arith.constant 0 : index
    %42 = vector.load %arg9[%c0_18, %c0_19] : memref<16x1xf32, #tpu.memory_space<vmem>>, vector<16x1xf32>
    tpu.vector_store %arg9[%c0_18, %c0_19], %41 {strides = array<i32>} : memref<16x1xf32, #tpu.memory_space<vmem>>, vector<16x1xf32>,
    %43 = arith.mulf %37, %37 : vector<16x128xf32>
    %44 = tpu.concatenate %37, %43 in 0 : vector<16x128xf32>, vector<16x128xf32> -> vector<32x128xf32>
    %45 = arith.mulf %12, %12 : vector<32x128xf32>
    %46 = tpu.concatenate %12, %45 in 0 : vector<32x128xf32>, vector<32x128xf32> -> vector<64x128xf32>
    %c0_20 = arith.constant 0 : index
    %c0_21 = arith.constant 0 : index
    %47 = vector.load %arg8[%c0_20, %c0_21] : memref<32x64xf32, #tpu.memory_space<vmem>>, vector<32x64xf32>
    %cst_22 = arith.constant dense<0.000000e+00> : vector<32x64xf32>
    %48 = tpu.matmul %44, %46, %cst_22 {dimension_numbers = #tpu.dot_dimension_numbers<[1], [1], [0], [0], [0, 0, 1, 0], [], []>} : vector<32x128xf32>, vector<64x128xf32>, vector<32x64xf32> -> vector<32x64xf32>
    %49 = arith.addf %47, %48 : vector<32x64xf32>
    %c0_23 = arith.constant 0 : index
    %c0_24 = arith.constant 0 : index
    %50 = vector.load %arg8[%c0_23, %c0_24] : memref<32x64xf32, #tpu.memory_space<vmem>>, vector<32x64xf32>
    tpu.vector_store %arg8[%c0_23, %c0_24], %49 {strides = array<i32>} : memref<32x64xf32, #tpu.memory_space<vmem>>, vector<32x64xf32>,
    %c0_i32_25 = arith.constant 0 : i32
    %51 = arith.cmpi eq, %arg1, %c0_i32_25 : i32
    %52 = arith.extui %51 : i1 to i32
    %c0_i32_26 = arith.constant 0 : i32
    %53 = arith.cmpi ne, %52, %c0_i32_26 : i32
    scf.if %53 {
      %c0_27 = arith.constant 0 : index
      %c0_28 = arith.constant 0 : index
      %54 = vector.load %arg8[%c0_27, %c0_28] : memref<32x64xf32, #tpu.memory_space<vmem>>, vector<32x64xf32>
      %55 = vector.extract_strided_slice %54 {offsets = [0, 0], sizes = [16, 32], strides = [1, 1]} : vector<32x64xf32> to vector<16x32xf32>
      %56 = vector.extract_strided_slice %54 {offsets = [16, 32], sizes = [16, 32], strides = [1, 1]} : vector<32x64xf32> to vector<16x32xf32>
      %c0_29 = arith.constant 0 : index
      %c0_30 = arith.constant 0 : index
      %57 = vector.load %arg9[%c0_29, %c0_30] : memref<16x1xf32, #tpu.memory_space<vmem>>, vector<16x1xf32>
      %cst_31 = arith.constant 1.000000e-07 : f32
      %58 = vector.broadcast %cst_31 : f32 to vector<16x1xf32>
      %59 = arith.addf %57, %58 : vector<16x1xf32>
      %cst_32 = arith.constant 6.400000e+01 : f32
      %60 = vector.broadcast %cst_32 : f32 to vector<16x1xf32>
      %61 = arith.mulf %60, %59 : vector<16x1xf32>
      %62 = vector.broadcast %61 : vector<16x1xf32> to vector<16x32xf32>
      %63 = arith.divf %55, %62 : vector<16x32xf32>
      %cst_33 = arith.constant 2.000000e+00 : f32
      %64 = vector.broadcast %cst_33 : f32 to vector<16x32xf32>
      %65 = arith.mulf %64, %63 : vector<16x32xf32>
      %66 = arith.mulf %65, %55 : vector<16x32xf32>
      %67 = arith.subf %56, %66 : vector<16x32xf32>
      %cst_34 = arith.constant 6.400000e+01 : f32
      %68 = vector.broadcast %cst_34 : f32 to vector<16x32xf32>
      %69 = arith.mulf %68, %63 : vector<16x32xf32>
      %70 = arith.mulf %69, %63 : vector<16x32xf32>
      %71 = arith.addf %67, %70 : vector<16x32xf32>
      %cst_35 = arith.constant 0.000000e+00 : f32
      %72 = vector.broadcast %cst_35 : f32 to vector<16x32xf32>
      %73 = arith.maximumf %71, %72 : vector<16x32xf32>
      %74 = vector.broadcast %59 : vector<16x1xf32> to vector<16x32xf32>
      %75 = arith.divf %73, %74 : vector<16x32xf32>
      %76 = math.sqrt %75 : vector<16x32xf32>
      %cst_36 = arith.constant 1.000000e-07 : f32
      %77 = vector.broadcast %cst_36 : f32 to vector<16x32xf32>
      %78 = arith.addf %76, %77 : vector<16x32xf32>
      %79 = tpu.reciprocal %78 {approx = true} : vector<16x32xf32> -> vector<16x32xf32>
      %c0_37 = arith.constant 0 : index
      %80 = memref.load %arg5[%c0_37] : memref<1xf32, #tpu.memory_space<smem>>
      %81 = arith.mulf %63, %79 : vector<16x32xf32>
      %82 = tpu.concatenate %79, %81 in 1 : vector<16x32xf32>, vector<16x32xf32> -> vector<16x64xf32>
      %83 = vector.broadcast %80 : f32 to vector<16x64xf32>
      %84 = arith.mulf %83, %82 : vector<16x64xf32>
      %c0_38 = arith.constant 0 : index
      %c0_39 = arith.constant 0 : index
      %c0_40 = arith.constant 0 : index
      %85 = vector.load %arg7[%c0_38, %c0_39, %c0_40] : memref<1x16x64xf32, #tpu.memory_space<vmem>>, vector<1x16x64xf32>
      %86 = vector.shape_cast %85 : vector<1x16x64xf32> to vector<16x64xf32>
      %87 = vector.shape_cast %84 : vector<16x64xf32> to vector<1x16x64xf32>
      tpu.vector_store %arg7[%c0_38, %c0_39, %c0_40], %87 {strides = array<i32>} : memref<1x16x64xf32, #tpu.memory_space<vmem>>, vector<1x16x64xf32>,
    } else {
    }
    return
  }
  func.func @transform_0(%arg0: i32, %arg1: i32) -> (i32, i32, i32) {
    %c0_i32 = arith.constant 0 : i32
    %c0_i32_0 = arith.constant 0 : i32
    return %arg0, %c0_i32, %arg1 : i32, i32, i32
  }
  func.func @transform_1(%arg0: i32, %arg1: i32) -> (i32, i32, i32) {
    %c0_i32 = arith.constant 0 : i32
    %c0_i32_0 = arith.constant 0 : i32
    %c0_i32_1 = arith.constant 0 : i32
    return %arg0, %c0_i32, %c0_i32_0 : i32, i32, i32
  }
  func.func @transform_2(%arg0: i32, %arg1: i32) -> (i32, i32, i32) {
    %c0_i32 = arith.constant 0 : i32
    %c0_i32_0 = arith.constant 0 : i32
    %c0_i32_1 = arith.constant 0 : i32
    return %arg0, %c0_i32, %c0_i32_0 : i32, i32, i32
  }
  func.func @transform_3(%arg0: i32, %arg1: i32) -> i32 {
    %c0_i32 = arith.constant 0 : i32
    %c0_i32_0 = arith.constant 0 : i32
    return %c0_i32 : i32
  }
  func.func @transform_4(%arg0: i32, %arg1: i32) -> (i32, i32, i32) {
    %c0_i32 = arith.constant 0 : i32
    %c0_i32_0 = arith.constant 0 : i32
    return %arg0, %c0_i32, %arg1 : i32, i32, i32
  }
  func.func @transform_5(%arg0: i32, %arg1: i32) -> (i32, i32, i32) {
    %c0_i32 = arith.constant 0 : i32
    %c0_i32_0 = arith.constant 0 : i32
    %c0_i32_1 = arith.constant 0 : i32
    return %arg0, %c0_i32, %c0_i32_0 : i32, i32, i32
  }
}

</mosaic_0001>

<bundles_post_ra>
// kernel: tpu_custom_call.1
= control target key start
LH: loop header
LB: loop body
LE: loop exit
PB: predicated region body
PF: predicated region fallthrough
CT: control target
= control target key end

     0   :  { %s1476_s0 = inlined_call_operand.vmem [shape: bf16[2,32,128], index: 0, kind: input, shape index: {}]   ;;  %s1477_s1 = inlined_call_operand.vmem [shape: bf16[2,48,32], index: 1, kind: input, shape index: {}]   ;;  %s1478_s2 = inlined_call_operand.vmem [shape: f32[2,48,1], index: 2, kind: input, shape index: {}]   ;;  %s1479_s3 = inlined_call_operand.<no memory space> [shape: f32[1], index: 3, kind: input, shape index: {}]   ;;  %s1480_s4 = inlined_call_operand.hbm [shape: bf16[2,16,128], index: 4, kind: output, shape index: {0}]   ;;  %s1481_s5 = inlined_call_operand.hbm [shape: f32[2,16,64], index: 5, kind: output, shape index: {1}]  }
   0x1   :  { %11 = sst [smem:[#allocation4]] %s1479_s3 }
   0x2   :  { %12 = vsyncpa [#allocation6], 0 }
   0x3   :  { %14 = vsyncpa [#allocation6 + $0x1], 0 }
   0x4   :  { %15 = vsyncpa [#allocation8], 0 }
   0x5   :  { %17 = vsyncpa [#allocation8 + $0x1], 0  ;;  %s1264_s20 = smov 0   ;;  %s1266_s21 = smov 0  }
   0x6   :  { %s1268_s22 = smov 0   ;;  %s1270_s23 = smov 0  }
   0x7   :  { %s1272_s24 = smov 0   ;;  %s1274_s25 = smov 0  }
   0x8 LB: > { %s896_s3 = sadd.s32 4294967295, %s1218_s25   ;;  %s897_s26 = sadd.s32 4294967294, %s1218_s25   ;;  %s1218_s25 = sphi %s1274_s25, %s23_s25   ;;  %s1214_s24 = sphi %s1272_s24, %s1488_s24   ;;  %s1210_s23 = sphi %s1270_s23, %s1487_s23   ;;  %s1206_s22 = sphi %s1268_s22, %s1486_s22   ;;  %s1202_s21 = sphi %s1266_s21, %s1485_s21   ;;  %s1198_s20 = sphi %s1264_s20, %s1484_s20  }
   0x9   : > { %s35_s27 = sadd.s32 1, %s1214_s24  ;;  %s145_s28 = sadd.s32 1, %s1206_s22 }
   0xa   : > { %p37_p0 = scmp.ge.s32.totalorder %s35_s27, 2  ;;  %p155_p1 = scmp.ne.s32.totalorder %s1206_s22, %s1202_s21 }
   0xb   : > { %p156_p2 = scmp.eq.s32.totalorder %s896_s3, 1  ;;  %p161_p3 = scmp.ne.s32.totalorder %s1202_s21, %s1198_s20 }
   0xc   : > { %s1490_s27 = smov (%p37_p0, %s35_s27), 0  ;;  %p162_p5 = scmp.eq.s32.totalorder %s897_s26, 1 }
   0xd   : > { %p1304_p4 = por %p156_p2, %p155_p1  ;;  %s140_s30 = ssub.s32 %s1214_s24, %s1490_s27 }
   0xe   : > { %p900_p6 = scmp.ge.s32.totalorder %s1218_s25, 1  ;;  %p143_p7 = scmp.eq.s32.totalorder %s140_s30, 0 }
   0xf   : > { %p1311_p8 = por %p162_p5, %p161_p3  ;;  %p236_p9 = scmp.lt.s32.totalorder %s1218_s25, 3 }
  0x10   : > { %s1317_s7 = scalar_select %p143_p7, %s1206_s22, %s145_s28  }
  0x11   : > { %p237_p10 = pnand %p900_p6, %p236_p9 }
  0x12   : > { %p282_p11 = scmp.lt.s32.totalorder (!%p237_p10), %s1210_s23, 1  ;;  %v1220_v0 = vmov (!%p237_p10), 0.0   ;;  %vm1221_vm0 = vmmov (!%p237_p10), 0   ;;  %v1222_v1 = vmov (!%p237_p10), 0   ;;  %vm386_vm1 = vcmask (!%p237_p10), 261120   ;;  %s1346_s26 = sand.u32 (!%p237_p10), 1, %s1202_s21  }
  0x13   : > { %240 = sbr.rel (%p237_p10) target bundleno = 1033 (0x409), region = 36  ;;  %954 = vmatprep.subr.bf16.mxu0 (!%p237_p10), %v1220_v0  ;;  %958 = vmatprep.mubr.msk.bf16.mxu0 (!%p237_p10), %vm1221_vm0, %v1220_v0  ;;  %vm310_vm2 = vcmask (!%p237_p10), 7168   ;;  %s901_s28 = sshll.u32 (!%p237_p10), %s1346_s26, 3  ;;  %vm305_vm4 = vcmask (!%p237_p10), 523264  }
  0x14   : > { %1080 = vset.pattern.permute.xlu1 (!%p237_p10), %v1222_v1  ;;  %1079 = vset.pattern.permute.xlu0 (!%p237_p10), %v1222_v1  ;;  %312 = vst.msk [vmem:[#allocation3 + $0x8] sm:$0xff] (!%p237_p10), %vm310_vm2, %v1220_v0  ;;  %311 = vst.msk [vmem:[#allocation3] sm:$0xff] (!%p237_p10), %vm310_vm2, %v1220_v0  ;;  %s1349_s30 = scalar_lea.vmem (!%p237_p10), [#allocation5], %s901_s28  ;;  %s727_s15 = scalar_lea.sflag (!%p237_p10), [#allocation6], %s1346_s26 }
  0x15   : > { %307 = vst.msk [vmem:[#allocation2 + $0x8] sm:$0xff] (!%p237_p10), %vm305_vm4, %v1220_v0  ;;  %306 = vst.msk [vmem:[#allocation2] sm:$0xff] (!%p237_p10), %vm305_vm4, %v1220_v0 }
  0x16   : > { %308 = vst.msk [vmem:[#allocation2 + $0x10] sm:$0xff] (!%p237_p10), %vm305_vm4, %v1220_v0  ;;  %309 = vst.msk [vmem:[#allocation2 + $0x18] sm:$0xff] (!%p237_p10), %vm305_vm4, %v1220_v0 }
  0x1a   : > { %s283_s8 = scalar_select %p282_p11, %s1210_s23, 1 }
  0x1c   : > { %s927_s9 = sshll.u32 %s283_s8, 4  ;;  %s1008_s10 = smul.u32 24, %s283_s8 }
  0x1d   : > { %s289_s13 = scalar_lea.vmem %s1476_s0, %s927_s9  ;;  %s1009_s14 = smul.u32 48, %s283_s8 }
  0x1e   : > { %v1081_v2 = vld [vmem:[%s289_s13] sm:$0xff]   ;;  %s294_s17 = scalar_lea.vmem %s1477_s1, %s1008_s10  ;;  %v1082_v3 = vld [vmem:[%s289_s13 + $0x8] sm:$0xff]   ;;  %s1223_s8 = smov 32  }
  0x1f   : > { %955 = vmatpush3.bf16.msra.mxu0 %v1081_v2  ;;  %s299_s3 = scalar_lea.vmem %s1478_s2, %s1009_s14  ;;  %v1083_v4 = vld [vmem:[%s294_s17] sm:$0xff]   ;;  %v1084_v11 = vld [vmem:[%s294_s17 + $0x8] sm:$0xff]   ;;  %v1085_v12 = vld [vmem:[%s294_s17 + $0x10] sm:$0xff]   ;;  %v486_v2 = vlaneseq  ;;  %s1224_s9 = smov 96  }
  0x20   : > { %956 = vmatprep.subr.bf16.mxu0 %v1220_v0  ;;  %v323_v5 = vld [vmem:[%s299_s3] sm:$0xff]  ;;  %v324_v7 = vld [vmem:[%s299_s3 + $0x8] sm:$0xff]  ;;  %v326_v9 = vld [vmem:[%s299_s3 + $0x18] sm:$0xff]  ;;  %s930_s10 = sshll.u32 %s1210_s23, 7  ;;  %s746_s14 = sshll.u32 %s1349_s30, 4  ;;  %s1387_s14 = int_to_ptr.vmem [resolvable:$true] %s746_s14 }
  0x21   : > { %v327_v6 = vld [vmem:[%s299_s3 + $0x20] sm:$0xff]  ;;  %331 = vperm.xlu1 %1080, %v323_v5   ;;  %v328_v8 = vld [vmem:[%s299_s3 + $0x28] sm:$0xff]  ;;  %v325_v10 = vld [vmem:[%s299_s3 + $0x10] sm:$0xff]  ;;  %s1384_s13 = scalar_lea.hbm %s1480_s4, %s930_s10  ;;  %s1108_s16 = scalar_lea.vmem %s1387_s14, 128 }
  0x22   : > { %351 = vperm.xlu0 %1079, %v327_v6   ;;  %p1109_p12 = scmp.ne.s32.totalorder %s1387_s14, %s1108_s16  ;;  %s1225_s17 = smov [#allocation5]  }
  0x23   : > { %957 = vmatpush3.bf16.msra.mxu0 %v1082_v3  ;;  %v487_v3 = vand.u32 127, %v486_v2  ;;  %s1112_s18 = sshll.u32 %s1225_s17, 4  ;;  %s1113_s18 = int_to_ptr.vmem [resolvable:$false] %s1112_s18 }
  0x24   : > { %p1110_p13 = pnand %p1109_p12, %p1304_p4  ;;  %s1114_s19 = scalar_lea.vmem %s1113_s18, 256 }
  0x25   : > { %336 = vperm.xlu1 %1080, %v324_v7   ;;  %vm491_vm3 = vcmp.lt.s32.totalorder %v487_v3, 64  ;;  %p1115_p1 = scmp.lt.s32.totalorder %s1387_s14, %s1113_s18  ;;  %p1116_p2 = scmp.lt.s32.totalorder %s1114_s19, %s1108_s16 }
  0x26   : > { %959 = vmatmul.mubr.msk.bf16.vlgmr.msra.gmra.mrb[0].mxu0 %vm386_vm1, %v1083_v4  ;;  %356 = vperm.xlu0 %1079, %v328_v8   ;;  %p1111_p0 = pneg %p1110_p13 }
  0x27   : > { %962 = vmatprep.mubr.msk.bf16.mxu0 %vm1221_vm0, %v1220_v0  ;;  %p1117_p3 = por %p1116_p2, %p1115_p1 }
  0x29   : > { %346 = vperm.xlu1 %1080, %v326_v9   ;;  %p1118_p5 = pnand %p1117_p3, %p1111_p0 }
  0x2a   : > { %341 = vperm.xlu0 %1079, %v325_v10  }
  0x2e   : > { %963 = vmatmul.mubr.msk.bf16.gmra.mrb[4].mxu0 %vm386_vm1, %v1084_v11 }
  0x2f   : > { %966 = vmatprep.mubr.msk.bf16.mxu0 %vm1221_vm0, %v1220_v0  ;;  %v514_v0 = vld [vmem:[#allocation2 + $0x8] sm:$0xff] }
  0x36   : > { %967 = vmatmul.mubr.msk.bf16.gmra.mrb[8].mxu0 %vm386_vm1, %v1085_v12  ;;  %v497_v12 = vld [vmem:[#allocation3 + $0x8] sm:$0xff] }
  0xa0   : > { %v332_v13 = vpop.permute.xlu1 %331 }
  0xa1   : > { %v352_v14 = vpop.permute.xlu0 %351 }
  0xa4   : > { %v337_v15 = vpop.permute.xlu1 %336 }
  0xa5   : > { %v357_v17 = vpop.permute.xlu0 %356 }
  0xa8   : > { %v347_v29 = vpop.permute.xlu1 %346 }
  0xa9   : > { %v342_v26 = vpop.permute.xlu0 %341 }
  0xf9   : > { %v430_v16 = vpop.f32.mrb[0].mxu0 }
  0xfa   : > { %v431_v18 = vadd.f32 %v430_v16, %v332_v13  ;;  %v960_v19 = vpop.f32.mrb[1].mxu0  ;;  %v496_v13 = vld [vmem:[#allocation3] sm:$0xff] }
  0xfb   : > { %v433_v20 = vpop.f32.mrb[2].mxu0 }
  0xfc   : > { %v434_v21 = vadd.f32 %v433_v20, %v337_v15  ;;  %v961_v22 = vpop.f32.mrb[3].mxu0  ;;  %v509_v23 = vmul.f32 %v431_v18, %v431_v18 }
  0xfe   : > { %v510_v24 = vmul.f32 %v434_v21, %v434_v21  ;;  %v992_v25 = vpack.c.bf16 %v434_v21, %v431_v18 }
 0x100   : > { %993 = vmatprep.subr.bf16.mxu1 %v992_v25  ;;  %v1000_v27 = vpack.c.bf16 %v510_v24, %v509_v23  ;;  %v513_v24 = vld [vmem:[#allocation2] sm:$0xff] }
 0x101   : > { %v438_v28 = vpop.f32.mrb[4].mxu0  ;;  %995 = vmatpush3.bf16.xpose.msra.mxu1 %v992_v25 }
 0x102   : > { %v439_v30 = vadd.f32 %v438_v28, %v342_v26  ;;  %v964_v31 = vpop.f32.mrb[5].mxu0 }
 0x103   : > { %v441_v32 = vpop.f32.mrb[6].mxu0 }
 0x104   : > { %v442_v33 = vadd.f32 %v441_v32, %v347_v29  ;;  %v965_v34 = vpop.f32.mrb[7].mxu0  ;;  %v511_v35 = vmul.f32 %v439_v30, %v439_v30  ;;  %v516_v29 = vld [vmem:[#allocation2 + $0x18] sm:$0xff] }
 0x106   : > { %v512_v36 = vmul.f32 %v442_v33, %v442_v33  ;;  %v996_v37 = vpack.c.bf16 %v442_v33, %v439_v30  ;;  %v515_v30 = vld [vmem:[#allocation2 + $0x10] sm:$0xff] }
 0x108   : > { %997 = vmatprep.subr.bf16.mxu1 %v996_v37  ;;  %v1004_v38 = vpack.c.bf16 %v512_v36, %v511_v35 }
 0x109   : > { %v446_v39 = vpop.f32.mrb[8].mxu0  ;;  %999 = vmatpush3.bf16.xpose.msra.mxu1 %v996_v37 }
 0x10a   : > { %v968_v40 = vpop.f32.mrb[9].mxu0  ;;  %1001 = vmatprep.subr.bf16.mxu1 %v1000_v27  ;;  %v447_v42 = vadd.f32 %v446_v39, %v352_v14 }
 0x10b   : > { %v449_v41 = vpop.f32.mrb[10].mxu0 }
 0x10c   : > { %v450_v43 = vadd.f32 %v449_v41, %v357_v17  ;;  %v969_v44 = vpop.f32.mrb[11].mxu0 }
 0x10e   : > { %v453_v45 = vmax.f32 %v447_v42, %v450_v43 }
 0x110   : > { %v454_v46 = vrot.slane %v453_v45, 4 }
 0x111   : > { %1003 = vmatpush3.bf16.xpose.msra.mxu1 %v1000_v27 }
 0x112   : > { %v455_v47 = vmax.f32 %v453_v45, %v454_v46  ;;  %1005 = vmatprep.subr.bf16.mxu1 %v1004_v38 }
 0x114   : > { %v456_v48 = vrot.slane %v455_v47, 2 }
 0x116   : > { %v457_v49 = vmax.f32 %v455_v47, %v456_v48 }
 0x118   : > { %v458_v50 = vrot.slane %v457_v49, 1 }
 0x119   : > { %1007 = vmatpush3.bf16.xpose.msra.mxu1 %v1004_v38 }
 0x11a   : > { %v459_v51 = vmax.f32 %v457_v49, %v458_v50 }
 0x11c   : > { %v460_v52 = vsub.f32 %v447_v42, %v459_v51  ;;  %v461_v53 = vsub.f32 %v450_v43, %v459_v51 }
 0x11e   : > { %v462_v54 = vmul.f32 1.442695, %v460_v52  ;;  %v464_v55 = vmul.f32 1.442695, %v461_v53 }
 0x120   : > { %1086 = vpow2.f32 %v462_v54 }
 0x121   : > { %1088 = vpow2.f32 %v464_v55 }
 0x12a   : > { %v1087_v56 = vpop.eup %1086 }
 0x12b   : > { %v1089_v57 = vpop.eup %1088 }
 0x12c   : > { %v466_v58 = vadd.f32 %v1089_v57, %v1087_v56 }
 0x12e   : > { %v467_v59 = vrot.slane %v466_v58, 4 }
 0x130   : > { %v468_v60 = vadd.f32 %v467_v59, %v466_v58 }
 0x132   : > { %v469_v61 = vrot.slane %v468_v60, 2 }
 0x134   : > { %v470_v62 = vadd.f32 %v469_v61, %v468_v60 }
 0x136   : > { %v471_v63 = vrot.slane %v470_v62, 1 }
 0x138   : > { %v472_v1 = vadd.f32 %v471_v63, %v470_v62 }
 0x13a   : > { %1090 = vrcp.f32 %v472_v1 }
 0x144   : > { %v1091_v4 = vpop.eup %1090 }
 0x145   : > { %v474_v5 = vmul.f32 %v1091_v4, %v1087_v56  ;;  %v475_v6 = vmul.f32 %v1091_v4, %v1089_v57 }
 0x147   : > { %986 = vmatprep.mubr.msk.f32.mxu1 %vm491_vm3, %v474_v5  ;;  %v495_v7 = vsel %vm491_vm3, %v475_v6, 0.0  ;;  %v935_v8 = vpack.c.bf16 %v475_v6, %v474_v5  ;;  %v494_v9 = vsel %vm491_vm3, %v474_v5, 0.0 }
 0x148   : > { %500 = vadd.xlane.f32.xlu1 %v495_v7  ;;  %987 = vmatmul.mubr.msk.f32.vlgmr.msra.gmra.mrb[0].mxu1 %vm491_vm3, %v475_v6  ;;  %v507_v10 = vmul.f32 %v494_v9, %v494_v9  ;;  %v508_v11 = vmul.f32 %v495_v7, %v495_v7 }
 0x149   : > { %498 = vadd.xlane.f32.xlu0 %v494_v9  ;;  %936 = vst [vmem:[%s1349_s30] sm:$0xff] %v935_v8  }
 0x14a   : > { %989 = vmatprep.mubr.f32.mxu1 %v507_v10 }
 0x14c   : > { %990 = vmatmul.mubr.f32.gmra.mrb[2].mxu1 %v508_v11 }
 0x1d5   : > { %v501_v14 = vpop.xlane.xlu1 %500 }
 0x1d6   : > { %v503_v15 = vadd.f32 %v501_v14, %v497_v12  ;;  %v499_v16 = vpop.xlane.xlu0 %498 }
 0x1d7   : > { %v502_v17 = vadd.f32 %v499_v16, %v496_v13 }
 0x1d8   : > { %506 = vst.msk [vmem:[#allocation3 + $0x8] sm:$0xff] %vm310_vm2, %v503_v15 }
 0x1d9   : > { %505 = vst.msk [vmem:[#allocation3] sm:$0xff] %vm310_vm2, %v502_v17 }
 0x1df   : > { %v619_v18 = vld [vmem:[#allocation3 + $0x8] sm:$0xff] }
 0x1e0   : > { %v621_v19 = vadd.f32 1e-07, %v619_v18  ;;  %v618_v20 = vld [vmem:[#allocation3] sm:$0xff] }
 0x1e1   : > { %v620_v21 = vadd.f32 1e-07, %v618_v20 }
 0x1e2   : > { %v623_v22 = vmul.f32 64.0, %v621_v19 }
 0x1e3   : > { %v622_v23 = vmul.f32 64.0, %v620_v21 }
 0x1e4   : > { %631 = vperm.xlu1 %1080, %v623_v22  }
 0x1e5   : > { %626 = vperm.xlu0 %1079, %v622_v23  }
 0x1e8   : > { %675 = vperm.xlu1 %1080, %v621_v19  }
 0x1e9   : > { %670 = vperm.xlu0 %1079, %v620_v21  }
 0x21b   : > { %v988_v25 = vpop.f32.mrb[0].mxu1 }
 0x21c   : > { %v603_v26 = vadd.f32 %v988_v25, %v514_v0  ;;  %v583_v27 = vpop.f32.mrb[1].mxu1 }
 0x21d   : > { %v602_v28 = vadd.f32 %v583_v27, %v513_v24 }
 0x21e   : > { %608 = vst.msk [vmem:[#allocation2 + $0x8] sm:$0xff] %vm305_vm4, %v603_v26 }
 0x21f   : > { %607 = vst.msk [vmem:[#allocation2] sm:$0xff] %vm305_vm4, %v602_v28  ;;  %v991_v31 = vpop.f32.mrb[2].mxu1 }
 0x220   : > { %v605_v32 = vadd.f32 %v991_v31, %v516_v29  ;;  %v593_v33 = vpop.f32.mrb[3].mxu1 }
 0x221   : > { %v604_v34 = vadd.f32 %v593_v33, %v515_v30 }
 0x222   : > { %610 = vst.msk [vmem:[#allocation2 + $0x18] sm:$0xff] %vm305_vm4, %v605_v32 }
 0x223   : > { %609 = vst.msk [vmem:[#allocation2 + $0x10] sm:$0xff] %vm305_vm4, %v604_v34 }
 0x225   : > { %v615_v38 = vld [vmem:[#allocation2 + $0x8] sm:$0xff] }
 0x226   : > { %v614_v41 = vld [vmem:[#allocation2] sm:$0xff] }
 0x229   : > { %v617_v55 = vld [vmem:[#allocation2 + $0x18] sm:$0xff] }
 0x22a   : > { %v616_v57 = vld [vmem:[#allocation2 + $0x10] sm:$0xff] }
 0x263   : > { %v632_v35 = vpop.permute.xlu1 %631 }
 0x264   : > { %1092 = vrcp.f32 %v632_v35  ;;  %v627_v36 = vpop.permute.xlu0 %626 }
 0x265   : > { %1094 = vrcp.f32 %v627_v36 }
 0x267   : > { %v676_v51 = vpop.permute.xlu1 %675 }
 0x268   : > { %v671_v52 = vpop.permute.xlu0 %670  ;;  %1096 = vrcp.f32 %v676_v51 }
 0x269   : > { %1098 = vrcp.f32 %v671_v52 }
 0x26e   : > { %v1093_v37 = vpop.eup %1092 }
 0x26f   : > { %v1095_v39 = vpop.eup %1094  ;;  %v1366_v40 = vmul.f32 %v1093_v37, %v615_v38 }
 0x270   : > { %v1368_v42 = vmul.f32 %v1095_v39, %v614_v41 }
 0x271   : > { %v639_v43 = vmul.f32 2.0, %v1366_v40  ;;  %v653_v46 = vmul.f32 64.0, %v1366_v40 }
 0x272   : > { %v638_v44 = vmul.f32 2.0, %v1368_v42  ;;  %v652_v48 = vmul.f32 64.0, %v1368_v42  ;;  %v1097_v1 = vpop.eup %1096 }
 0x273   : > { %v641_v45 = vmul.f32 %v639_v43, %v615_v38  ;;  %v655_v49 = vmul.f32 %v653_v46, %v1366_v40  ;;  %v1099_v3 = vpop.eup %1098 }
 0x274   : > { %v640_v47 = vmul.f32 %v638_v44, %v614_v41  ;;  %v654_v50 = vmul.f32 %v652_v48, %v1368_v42 }
 0x275   : > { %646 = vrot.lane.b32.xlu1 %v641_v45, %s1223_s8 }
 0x276   : > { %644 = vrot.lane.b32.xlu0 %v640_v47, %s1223_s8 }
 0x279   : > { %660 = vrot.lane.b32.xlu1 %v655_v49, %s1223_s8 }
 0x27a   : > { %658 = vrot.lane.b32.xlu0 %v654_v50, %s1223_s8 }
 0x2e7   : > { %v647_v53 = vpop.permute.xlu1 %646 }
 0x2e8   : > { %v645_v54 = vpop.permute.xlu0 %644  ;;  %v651_v56 = vsub.f32 %v617_v55, %v647_v53 }
 0x2e9   : > { %v650_v58 = vsub.f32 %v616_v57, %v645_v54 }
 0x2eb   : > { %v661_v59 = vpop.permute.xlu1 %660 }
 0x2ec   : > { %v665_v60 = vadd.f32 %v661_v59, %v651_v56  ;;  %v659_v61 = vpop.permute.xlu0 %658 }
 0x2ed   : > { %v664_v62 = vadd.f32 %v659_v61, %v650_v58 }
 0x2ee   : > { %v667_v63 = vmax.f32 %v665_v60, 0.0 }
 0x2ef   : > { %v666_v2 = vmax.f32 %v664_v62, 0.0 }
 0x2f0   : > { %v681_v4 = vmul.f32 %v1097_v1, %v667_v63 }
 0x2f1   : > { %v679_v5 = vmul.f32 %v1099_v3, %v666_v2 }
 0x2f2   : > { %1100 = vrsqrt.f32 %v681_v4  ;;  %vm691_vm5 = vcmp.eq.f32.partialorder %v681_v4, inf  ;;  %v694_v9 = vand.u32 2147483648, %v681_v4  ;;  %vm693_vm6 = vcmp.eq.f32.partialorder %v681_v4, 0.0 }
 0x2f3   : > { %1102 = vrsqrt.f32 %v679_v5  ;;  %vm684_vm7 = vcmp.eq.f32.partialorder %v679_v5, inf  ;;  %v687_v12 = vand.u32 2147483648, %v679_v5  ;;  %vm686_vm8 = vcmp.eq.f32.partialorder %v679_v5, 0.0 }
 0x2fc   : > { %v1101_v6 = vpop.eup %1100 }
 0x2fd   : > { %v1103_v7 = vpop.eup %1102  ;;  %v690_v8 = vmul.f32 %v1101_v6, %v681_v4 }
 0x2fe   : > { %v683_v10 = vmul.f32 %v1103_v7, %v679_v5 }
 0x2ff   : > { %v692_v11 = vsel %vm691_vm5, %v681_v4, %v690_v8 }
 0x300   : > { %v695_v13 = vsel %vm693_vm6, %v694_v9, %v692_v11  ;;  %v685_v14 = vsel %vm684_vm7, %v679_v5, %v683_v10 }
 0x301   : > { %v697_v15 = vadd.f32 1e-07, %v695_v13  ;;  %v688_v16 = vsel %vm686_vm8, %v687_v12, %v685_v14 }
 0x302   : > { %v696_v17 = vadd.f32 1e-07, %v688_v16 }
 0x303   : > { %1104 = vrcp.f32 %v697_v15 }
 0x304   : > { %1106 = vrcp.f32 %v696_v17 }
 0x30d   : > { %v1105_v18 = vpop.eup %1104 }
 0x30e   : > { %v1107_v19 = vpop.eup %1106  ;;  %705 = vrot.lane.b32.xlu1 %v1105_v18, %s1224_s9 }
 0x30f   : > { %703 = vrot.lane.b32.xlu0 %v1107_v19, %s1224_s9 }
 0x310   : > { %1121 = shalt.err (!%p1118_p5)
}
 0x311   : > { %s1122_s3 = scalar_lea.hbm %s1384_s13, 128  ;;  %s1126_s9 = scalar_lea.hbm %s1480_s4, 256 }
 0x312   : > { %p1123_p6 = scmp.ne.s32.totalorder %s1384_s13, %s1122_s3  ;;  %p1127_p10 = scmp.lt.u32.totalorder %s1384_s13, %s1480_s4 }
 0x313   : > { %p1128_p11 = scmp.lt.u32.totalorder %s1126_s9, %s1122_s3  ;;  %p1130_p13 = scmp.lt.u32.totalorder %s1122_s3, %s1384_s13 }
 0x314   : > { %p1124_p7 = pnand %p1123_p6, %p1304_p4 }
 0x315   : > { %p1129_p12 = por %p1128_p11, %p1127_p10 }
 0x316   : > { %p1125_p9 = pneg %p1124_p7 }
 0x317   : > { %p1131_p0 = por %p1130_p13, %p1129_p12 }
 0x319   : > { %p1132_p1 = pnand %p1131_p0, %p1125_p9 }
 0x31b   : > { %1135 = shalt.err (!%p1132_p1)
}
 0x31c   : > { %s1226_s12 = smov 64   ;;  %s1227_s16 = smov 4  }
 0x31d   : > { %1010 = dma.vmem_to_hbm [thread:$0]  (%p1304_p4), %s1387_s14, 128, %s1384_s13, %s727_s15, %s1226_s12, %s1226_s12, %s1227_s16  }
 0x31e   : > { %s700_s17 = sld [smem:[#allocation4]]  ;;  %s902_s18 = sshll.u32 %s1346_s26, 4 }
 0x31f   : > { %s281_s19 = scalar_lea.vmem [#allocation7], %s902_s18  ;;  %s931_s28 = sshll.u32 %s1210_s23, 8 }
 0x320   : > { %s762_s3 = sshll.u32 %s281_s19, 4  ;;  %s1424_s15 = scalar_lea.hbm %s1481_s5, %s931_s28  ;;  %s1426_s3 = int_to_ptr.vmem [resolvable:$true] %s762_s3 }
 0x321   : > { %s732_s23 = scalar_lea.sflag [#allocation8], %s1346_s26  ;;  %s1228_s30 = smov [#allocation7]  }
 0x322   : > { %s1140_s9 = sshll.u32 %s1228_s30, 4  ;;  %s1141_s9 = int_to_ptr.vmem [resolvable:$false] %s1140_s9 }
 0x323   : > { %s1142_s10 = scalar_lea.vmem %s1141_s9, 512  ;;  %p1143_p6 = scmp.lt.s32.totalorder %s1426_s3, %s1141_s9 }
 0x324   : > { %v721_v0 = vstv %s700_s17 }
 0x380   : > { %v706_v20 = vpop.permute.xlu1 %705 }
 0x381   : > { %v710_v21 = vmul.f32 %v706_v20, %v1366_v40  ;;  %v704_v22 = vpop.permute.xlu0 %703 }
 0x382   : > { %v709_v23 = vmul.f32 %v704_v22, %v1368_v42 }
 0x383   : > { %715 = vrot.lane.b32.xlu1 %v710_v21, %s1223_s8 }
 0x384   : > { %713 = vrot.lane.b32.xlu0 %v709_v23, %s1223_s8  ;;  %s1136_s8 = scalar_lea.vmem %s1426_s3, 256 }
 0x385   : > { %p1137_p2 = scmp.ne.s32.totalorder %s1426_s3, %s1136_s8  ;;  %p1144_p7 = scmp.lt.s32.totalorder %s1142_s10, %s1136_s8 }
 0x387   : > { %p1138_p3 = pnand %p1137_p2, %p1304_p4  ;;  %p1145_p9 = por %p1144_p7, %p1143_p6 }
 0x389   : > { %p1139_p5 = pneg %p1138_p3 }
 0x38b   : > { %p1146_p10 = pnand %p1145_p9, %p1139_p5 }
 0x3f5   : > { %v716_v24 = vpop.permute.xlu1 %715 }
 0x3f6   : > { %v720_v25 = vsel %vm386_vm1, %v706_v20, %v716_v24  ;;  %v714_v26 = vpop.permute.xlu0 %713 }
 0x3f7   : > { %v723_v27 = vmul.f32 %v721_v0, %v720_v25  ;;  %v719_v28 = vsel %vm386_vm1, %v704_v22, %v714_v26 }
 0x3f8   : > { %v722_v29 = vmul.f32 %v721_v0, %v719_v28 }
 0x3f9   : > { %725 = vst.msk [vmem:[%s281_s19 + $0x8] sm:$0xff] %vm305_vm4, %v723_v27 }
 0x3fa   : > { %724 = vst.msk [vmem:[%s281_s19] sm:$0xff] %vm305_vm4, %v722_v29 }
 0x3fb   : > { %1149 = shalt.err (!%p1146_p10)
}
 0x3fc   : > { %s1150_s11 = scalar_lea.hbm %s1424_s15, 256  ;;  %s1154_s17 = scalar_lea.hbm %s1481_s5, 512 }
 0x3fd   : > { %p1151_p11 = scmp.ne.s32.totalorder %s1424_s15, %s1150_s11  ;;  %p1155_p0 = scmp.lt.u32.totalorder %s1424_s15, %s1481_s5 }
 0x3fe   : > { %p1156_p1 = scmp.lt.u32.totalorder %s1154_s17, %s1150_s11  ;;  %p1158_p3 = scmp.lt.u32.totalorder %s1150_s11, %s1424_s15 }
 0x3ff   : > { %p1152_p12 = pnand %p1151_p11, %p1304_p4 }
 0x400   : > { %p1157_p2 = por %p1156_p1, %p1155_p0 }
 0x401   : > { %p1153_p13 = pneg %p1152_p12 }
 0x402   : > { %p1159_p5 = por %p1158_p3, %p1157_p2 }
 0x404   : > { %p1160_p6 = pnand %p1159_p5, %p1153_p13 }
 0x406   : > { %1163 = shalt.err (!%p1160_p6)
}
 0x407   : > { %s1229_s28 = smov 128   ;;  %s1230_s13 = smov 8  }
 0x408   : > { %1011 = dma.vmem_to_hbm [thread:$0]  (%p1304_p4), %s1426_s3, 256, %s1424_s15, %s732_s23, %s1229_s28, %s1229_s28, %s1230_s13  }
 0x409 PF: > { %p1021_p7 = scmp.ge.s32.totalorder %s1218_s25, 2  ;;  %s777_s14 = sand.u32 1, %s1198_s20  }
 0x40a   : > { %s778_s8 = scalar_lea.sflag [#allocation6], %s777_s14 }
 0x40b   : > { %p1015_p9 = pnand %p1021_p7, %p1311_p8 }
 0x40d   : > { %1189 = dma.done.wait (!%p1015_p9), %s778_s8, 128  }
 0x40e   : > { %1191 = vsyncadd (!%p1015_p9), %s778_s8, 4294967168  ;;  %s787_s30 = scalar_lea.sflag [#allocation8], %s777_s14 }
 0x40f   : > { %1193 = dma.done.wait (!%p1015_p9), %s787_s30, 256  }
 0x410   : > { %1195 = vsyncadd (!%p1015_p9), %s787_s30, 4294967040  ;;  %s23_s25 = sadd.s32 1, %s1218_s25   ;;  %s1484_s20 = smov %s1202_s21 }
 0x411   : > { %p20_p10 = scmp.ge.s32.totalorder %s23_s25, 4   ;;  %s1485_s21 = smov %s1206_s22 }
 0x412   : > { %s1486_s22 = smov %s1317_s7  ;;  %s1487_s23 = smov %s1214_s24 }
 0x413   : > { %s1488_s24 = smov %s1490_s27  ;;  %22 = sbr.rel (!%p20_p10) target bundleno = 8 (0x8), region = 102 }
 0x41a   :  { %792 = vsyncpa [#allocation6], 1 }
 0x41b   :  { %794 = vsyncpa [#allocation6 + $0x1], 1 }
 0x41c   :  { %795 = vsyncpa [#allocation8], 1 }
 0x41d   :  { %797 = vsyncpa [#allocation8 + $0x1], 1 }

</bundles_post_ra>
